<compile_context>
chip_gen: v5e
topology: v5e:2x2
jax: 0.10.0
libtpu: 0.0.40
codegen_flags: <defaults>
</compile_context>

<pallas_src>
import functools

import jax
import jax.numpy as jnp
from jax.experimental import pallas as pl
from jax.experimental.pallas import tpu as pltpu

_LANES = 128
_TARGET_STEP_BYTES = 2 * 1024 * 1024   # behavior bytes per grid step


def _block_diag(w, p):
    """(K, N) -> (p*K, p*N) block-diagonal with p copies of w."""
    if p == 1:
        return w
    k, n = w.shape
    out = jnp.zeros((p * k, p * n), w.dtype)
    for i in range(p):
        out = out.at[i * k:(i + 1) * k, i * n:(i + 1) * n].set(w)
    return out


def _din_attn_kernel(x_ref, c_ref, cb_ref, wx_ref, wxc_ref, w2_ref, sc_ref,
                     o_ref):
    bt, rt, lanes = x_ref.shape            # (Bt, Rt, pack*E)
    rows = bt * rt
    hh = wx_ref.shape[1]                   # pack*H

    x3 = x_ref[...]                        # (Bt, Rt, L) packed behavior rows
    xc3 = x3 * c_ref[...]                  # candidate broadcast over Rt rows

    x = x3.reshape(rows, lanes)            # tile-aligned merge of leading dims
    xc = xc3.reshape(rows, lanes)

    # h = x @ blkdiag(W1a+W1c) + (x*c) @ blkdiag(W1d)
    h = jnp.dot(x, wx_ref[...], preferred_element_type=jnp.float32)
    h = h + jnp.dot(xc, wxc_ref[...], preferred_element_type=jnp.float32)

    # + (c @ (W1b-W1c) + b1), lane-tiled per batch row
    h = h.reshape(bt, rt, hh) + cb_ref[...]

    # PReLU (single learnable slope, PyTorch default num_parameters=1)
    slope = sc_ref[0]
    h = jnp.where(h >= 0.0, h, slope * h)

    # linear2 as a block-diagonal (pack*H, pack) projection
    z = jnp.dot(h.reshape(rows, hh), w2_ref[...],
                preferred_element_type=jnp.float32)          # (rows, pack)
    z = z + sc_ref[1]
    o_ref[...] = jax.nn.sigmoid(z).reshape(o_ref.shape).astype(o_ref.dtype)


@jax.jit
def din_attention(behavior, candidate, w1, b1, w2, b2, prelu_w):
    """behavior: (B, F, E) f32; candidate: (B, 1, E) f32 -> (B, F, 1) f32."""
    B, F, E = behavior.shape
    H = w1.shape[1]                        # hidden width (32)
    f32 = jnp.float32

    behavior = behavior.astype(f32)
    candidate = candidate.astype(f32)
    w1 = w1.astype(f32)
    b1 = b1.astype(f32)
    w2 = w2.astype(f32)

    # lane-packing factor: `pack` consecutive field rows per 128-lane vreg row
    pack = _LANES // E if (E <= _LANES and _LANES % E == 0) else 1
    L = pack * E

    # Fold the concat into pre-split weights, then make them block-diagonal.
    wx = w1[0:E] + w1[2 * E:3 * E]                 # acts on x
    wc = w1[E:2 * E] - w1[2 * E:3 * E]             # acts on c
    wxc = w1[3 * E:4 * E]                          # acts on x*c
    wx_bd = _block_diag(wx, pack)                  # (L, pack*H)
    wxc_bd = _block_diag(wxc, pack)                # (L, pack*H)
    w2_bd = _block_diag(w2.reshape(H, 1), pack)    # (pack*H, pack)

    # Candidate contribution + b1, once per batch row (tiny XLA matmul),
    # lane-tiled `pack` times so it lines up with the packed hidden lanes.
    cb = candidate.reshape(B, E) @ wc + b1.reshape(1, H)           # (B, H)
    cb = jnp.tile(cb, (1, pack)).reshape(B, 1, pack * H)           # (B,1,pack*H)
    c_tiled = jnp.tile(candidate.reshape(B, E), (1, pack)).reshape(B, 1, L)

    slope = jnp.asarray(prelu_w, f32).reshape(-1)[0]
    b2_s = jnp.asarray(b2, f32).reshape(-1)[0]
    scalars = jnp.stack([slope, b2_s])             # (2,) f32 -> SMEM

    # ---- tiling: big, lane-dense blocks ---------------------------------
    row_bytes = L * 4
    target_rows = max(8, (_TARGET_STEP_BYTES // row_bytes) // 8 * 8)

    r_min = -(-F // pack)                          # packed rows per example
    rt = min(-(-r_min // 8) * 8, target_rows)      # row tile (multiple of 8)
    r_pad = -(-r_min // rt) * rt
    f_pad = r_pad * pack

    if r_pad == rt:                                # whole example per step ->
        bt = max(1, min(B, target_rows // rt))     # stack batch rows per step
    else:
        bt = 1
    # keep >= 2 grid steps when possible so v7x megacore sharding engages
    while bt > 1 and (-(-B // bt)) * (r_pad // rt) < 2:
        bt = max(1, bt // 2)
    b_pad = -(-B // bt) * bt

    # ---- pad + lane-pack --------------------------------------------------
    if f_pad != F or b_pad != B:
        behavior = jnp.pad(behavior, ((0, b_pad - B), (0, f_pad - F), (0, 0)))
    if b_pad != B:
        c_tiled = jnp.pad(c_tiled, ((0, b_pad - B), (0, 0), (0, 0)))
        cb = jnp.pad(cb, ((0, b_pad - B), (0, 0), (0, 0)))
    x_packed = behavior.reshape(b_pad, r_pad, L)   # free contiguous reshape

    grid = (b_pad // bt, r_pad // rt)

    out = pl.pallas_call(
        _din_attn_kernel,
        out_shape=jax.ShapeDtypeStruct((b_pad, r_pad, pack), f32),
        grid_spec=pltpu.PrefetchScalarGridSpec(
            num_scalar_prefetch=0,
            grid=grid,
            in_specs=[
                pl.BlockSpec((bt, rt, L), lambda b, r: (b, r, 0)),         # x
                pl.BlockSpec((bt, 1, L), lambda b, r: (b, 0, 0)),          # c
                pl.BlockSpec((bt, 1, pack * H), lambda b, r: (b, 0, 0)),   # cb
                pl.BlockSpec((L, pack * H), lambda b, r: (0, 0)),          # Wx
                pl.BlockSpec((L, pack * H), lambda b, r: (0, 0)),          # Wxc
                pl.BlockSpec((pack * H, pack), lambda b, r: (0, 0)),       # W2
                pl.BlockSpec(memory_space=pltpu.MemorySpace.SMEM),   # [slope,b2]
            ],
            out_specs=pl.BlockSpec((bt, rt, pack), lambda b, r: (b, r, 0)),
        ),
        compiler_params=pltpu.CompilerParams(
            dimension_semantics=("parallel", "parallel")),
    )(x_packed, c_tiled, cb, wx_bd, wxc_bd, w2_bd, scalars)

    # unpack lanes back to field rows: (B, R, pack) -> (B, F_pad, 1) -> slice
    return out.reshape(b_pad, f_pad, 1)[:B, :F, :]


def din_attention_ref(behavior, candidate, w1, b1, w2, b2, prelu_w):
    c = jnp.broadcast_to(candidate, behavior.shape)
    feat = jnp.concatenate([behavior, c, behavior - c, behavior * c], axis=-1)
    h = feat @ w1 + b1
    h = jnp.where(h >= 0.0, h, prelu_w * h)
    z = h @ w2 + b2
    return jax.nn.sigmoid(z)


if __name__ == "__main__":
    # small shapes consistent with the module's forward
    B, F, E = 2, 8, 32

    key = jax.random.PRNGKey(0)
    kb, kc, kw1, kb1, kw2, kb2 = jax.random.split(key, 6)

    behavior = jax.random.normal(kb, (B, F, E), dtype=jnp.float32)
    candidate = jax.random.normal(kc, (B, 1, E), dtype=jnp.float32)

    # parameter shapes from nn.Linear(4E, 32), nn.Linear(32, 1), nn.PReLU()
    w1 = jax.random.normal(kw1, (4 * E, 32), dtype=jnp.float32) * 0.05
    b1 = jax.random.normal(kb1, (32,), dtype=jnp.float32) * 0.05
    w2 = jax.random.normal(kw2, (32, 1), dtype=jnp.float32) * 0.05
    b2 = jax.random.normal(kb2, (1,), dtype=jnp.float32) * 0.05
    prelu_w = jnp.array(0.25, dtype=jnp.float32)   # PyTorch PReLU default init

    out = din_attention(behavior, candidate, w1, b1, w2, b2, prelu_w)
    out = jax.block_until_ready(out)

    ref = din_attention_ref(behavior, candidate, w1, b1, w2, b2, prelu_w)
    assert out.shape == (B, F, 1)
    assert jnp.allclose(out, ref, atol=1e-5, rtol=1e-5)

    print("KERNEL_OK")
</pallas_src>

<mosaic_0001>
module attributes {stable_mosaic.version = 11 : i64} {
  func.func @_din_attn_kernel(%arg0: i32, %arg1: i32, %arg2: memref<1x8x128xf32, #tpu.memory_space<vmem>>, %arg3: memref<1x1x128xf32, #tpu.memory_space<vmem>>, %arg4: memref<1x1x128xf32, #tpu.memory_space<vmem>>, %arg5: memref<128x128xf32, #tpu.memory_space<vmem>>, %arg6: memref<128x128xf32, #tpu.memory_space<vmem>>, %arg7: memref<128x4xf32, #tpu.memory_space<vmem>>, %arg8: memref<2xf32, #tpu.memory_space<smem>>, %arg9: memref<1x8x4xf32, #tpu.memory_space<vmem>>) attributes {dimension_semantics = [#tpu.dimension_semantics<parallel>, #tpu.dimension_semantics<parallel>], iteration_bounds = array<i64: 2, 1>, scalar_prefetch = 0 : i64, scratch_operands = 0 : i64, tpu.core_type = #tpu.core_type<tc>, window_params = [{transform_indices = @transform_0, window_bounds = array<i64: 1, 8, 128>}, {transform_indices = @transform_1, window_bounds = array<i64: 1, 1, 128>}, {transform_indices = @transform_2, window_bounds = array<i64: 1, 1, 128>}, {pipeline_mode = #tpu.pipeline_mode<synchronous>, transform_indices = @transform_3, window_bounds = array<i64: 128, 128>}, {pipeline_mode = #tpu.pipeline_mode<synchronous>, transform_indices = @transform_4, window_bounds = array<i64: 128, 128>}, {pipeline_mode = #tpu.pipeline_mode<synchronous>, transform_indices = @transform_5, window_bounds = array<i64: 128, 4>}, {transform_indices = @transform_6, window_bounds = array<i64: 2>}, {transform_indices = @transform_7, window_bounds = array<i64: 1, 8, 4>}]} {
    %c0 = arith.constant 0 : index
    %c0_0 = arith.constant 0 : index
    %c0_1 = arith.constant 0 : index
    %0 = vector.load %arg2[%c0, %c0_0, %c0_1] : memref<1x8x128xf32, #tpu.memory_space<vmem>>, vector<1x8x128xf32>
    %c0_2 = arith.constant 0 : index
    %c0_3 = arith.constant 0 : index
    %c0_4 = arith.constant 0 : index
    %1 = vector.load %arg3[%c0_2, %c0_3, %c0_4] : memref<1x1x128xf32, #tpu.memory_space<vmem>>, vector<1x1x128xf32>
    %2 = vector.broadcast %1 : vector<1x1x128xf32> to vector<1x8x128xf32>
    %3 = arith.mulf %0, %2 : vector<1x8x128xf32>
    %4 = vector.shape_cast %0 : vector<1x8x128xf32> to vector<8x128xf32>
    %5 = vector.shape_cast %3 : vector<1x8x128xf32> to vector<8x128xf32>
    %c0_5 = arith.constant 0 : index
    %c0_6 = arith.constant 0 : index
    %6 = vector.load %arg5[%c0_5, %c0_6] : memref<128x128xf32, #tpu.memory_space<vmem>>, vector<128x128xf32>
    %cst = arith.constant dense<0.000000e+00> : vector<8x128xf32>
    %7 = tpu.matmul %4, %6, %cst {dimension_numbers = #tpu.dot_dimension_numbers<[1], [0], [0], [1], [0, 0, 1, 1], [], []>} : vector<8x128xf32>, vector<128x128xf32>, vector<8x128xf32> -> vector<8x128xf32>
    %c0_7 = arith.constant 0 : index
    %c0_8 = arith.constant 0 : index
    %8 = vector.load %arg6[%c0_7, %c0_8] : memref<128x128xf32, #tpu.memory_space<vmem>>, vector<128x128xf32>
    %cst_9 = arith.constant dense<0.000000e+00> : vector<8x128xf32>
    %9 = tpu.matmul %5, %8, %cst_9 {dimension_numbers = #tpu.dot_dimension_numbers<[1], [0], [0], [1], [0, 0, 1, 1], [], []>} : vector<8x128xf32>, vector<128x128xf32>, vector<8x128xf32> -> vector<8x128xf32>
    %10 = arith.addf %7, %9 : vector<8x128xf32>
    %11 = vector.shape_cast %10 : vector<8x128xf32> to vector<1x8x128xf32>
    %c0_10 = arith.constant 0 : index
    %c0_11 = arith.constant 0 : index
    %c0_12 = arith.constant 0 : index
    %12 = vector.load %arg4[%c0_10, %c0_11, %c0_12] : memref<1x1x128xf32, #tpu.memory_space<vmem>>, vector<1x1x128xf32>
    %13 = vector.broadcast %12 : vector<1x1x128xf32> to vector<1x8x128xf32>
    %14 = arith.addf %11, %13 : vector<1x8x128xf32>
    %c0_13 = arith.constant 0 : index
    %15 = memref.load %arg8[%c0_13] : memref<2xf32, #tpu.memory_space<smem>>
    %cst_14 = arith.constant 0.000000e+00 : f32
    %16 = vector.broadcast %cst_14 : f32 to vector<1x8x128xf32>
    %17 = arith.cmpf oge, %14, %16 : vector<1x8x128xf32>
    %18 = vector.broadcast %15 : f32 to vector<1x8x128xf32>
    %19 = arith.mulf %18, %14 : vector<1x8x128xf32>
    %20 = arith.select %17, %14, %19 : vector<1x8x128xi1>, vector<1x8x128xf32>
    %21 = vector.shape_cast %20 : vector<1x8x128xf32> to vector<8x128xf32>
    %c0_15 = arith.constant 0 : index
    %c0_16 = arith.constant 0 : index
    %22 = vector.load %arg7[%c0_15, %c0_16] : memref<128x4xf32, #tpu.memory_space<vmem>>, vector<128x4xf32>
    %cst_17 = arith.constant dense<0.000000e+00> : vector<8x4xf32>
    %23 = tpu.matmul %21, %22, %cst_17 {dimension_numbers = #tpu.dot_dimension_numbers<[1], [0], [0], [1], [0, 0, 1, 1], [], []>} : vector<8x128xf32>, vector<128x4xf32>, vector<8x4xf32> -> vector<8x4xf32>
    %c1 = arith.constant 1 : index
    %24 = memref.load %arg8[%c1] : memref<2xf32, #tpu.memory_space<smem>>
    %25 = vector.broadcast %24 : f32 to vector<8x4xf32>
    %26 = arith.addf %23, %25 : vector<8x4xf32>
    %27 = arith.negf %26 : vector<8x4xf32>
    %28 = math.exp %27 : vector<8x4xf32>
    %cst_18 = arith.constant 1.000000e+00 : f32
    %29 = vector.broadcast %cst_18 : f32 to vector<8x4xf32>
    %30 = arith.addf %29, %28 : vector<8x4xf32>
    %31 = arith.divf %29, %30 : vector<8x4xf32>
    %32 = vector.shape_cast %31 : vector<8x4xf32> to vector<1x8x4xf32>
    %c0_19 = arith.constant 0 : index
    %c0_20 = arith.constant 0 : index
    %c0_21 = arith.constant 0 : index
    %33 = vector.load %arg9[%c0_19, %c0_20, %c0_21] : memref<1x8x4xf32, #tpu.memory_space<vmem>>, vector<1x8x4xf32>
    tpu.vector_store %arg9[%c0_19, %c0_20, %c0_21], %32 {strides = array<i32>} : memref<1x8x4xf32, #tpu.memory_space<vmem>>, vector<1x8x4xf32>,
    return
  }
  func.func @transform_0(%arg0: i32, %arg1: i32) -> (i32, i32, i32) {
    %c0_i32 = arith.constant 0 : i32
    %c0_i32_0 = arith.constant 0 : i32
    return %arg0, %arg1, %c0_i32 : i32, i32, i32
  }
  func.func @transform_1(%arg0: i32, %arg1: i32) -> (i32, i32, i32) {
    %c0_i32 = arith.constant 0 : i32
    %c0_i32_0 = arith.constant 0 : i32
    %c0_i32_1 = arith.constant 0 : i32
    return %arg0, %c0_i32, %c0_i32_0 : i32, i32, i32
  }
  func.func @transform_2(%arg0: i32, %arg1: i32) -> (i32, i32, i32) {
    %c0_i32 = arith.constant 0 : i32
    %c0_i32_0 = arith.constant 0 : i32
    %c0_i32_1 = arith.constant 0 : i32
    return %arg0, %c0_i32, %c0_i32_0 : i32, i32, i32
  }
  func.func @transform_3(%arg0: i32, %arg1: i32) -> (i32, i32) {
    %c0_i32 = arith.constant 0 : i32
    %c0_i32_0 = arith.constant 0 : i32
    %c0_i32_1 = arith.constant 0 : i32
    return %c0_i32, %c0_i32_0 : i32, i32
  }
  func.func @transform_4(%arg0: i32, %arg1: i32) -> (i32, i32) {
    %c0_i32 = arith.constant 0 : i32
    %c0_i32_0 = arith.constant 0 : i32
    %c0_i32_1 = arith.constant 0 : i32
    return %c0_i32, %c0_i32_0 : i32, i32
  }
  func.func @transform_5(%arg0: i32, %arg1: i32) -> (i32, i32) {
    %c0_i32 = arith.constant 0 : i32
    %c0_i32_0 = arith.constant 0 : i32
    %c0_i32_1 = arith.constant 0 : i32
    return %c0_i32, %c0_i32_0 : i32, i32
  }
  func.func @transform_6(%arg0: i32, %arg1: i32) -> i32 {
    %c0_i32 = arith.constant 0 : i32
    %c0_i32_0 = arith.constant 0 : i32
    return %c0_i32 : i32
  }
  func.func @transform_7(%arg0: i32, %arg1: i32) -> (i32, i32, i32) {
    %c0_i32 = arith.constant 0 : i32
    %c0_i32_0 = arith.constant 0 : i32
    return %arg0, %arg1, %c0_i32 : i32, i32, i32
  }
}

</mosaic_0001>

<bundles_post_ra>
// kernel: din_attention.1
= control target key start
LH: loop header
LB: loop body
LE: loop exit
PB: predicated region body
PF: predicated region fallthrough
CT: control target
= control target key end

     0   :  { %12 = vsyncpa [#allocation3], 0  ;;  %s737_s24 = smov 0   ;;  %s739_s25 = smov 0   ;;  %s942_s0 = inlined_call_operand.vmem [shape: f32[2,8,128], index: 0, kind: input, shape index: {}]   ;;  %s943_s1 = inlined_call_operand.vmem [shape: f32[2,1,128], index: 1, kind: input, shape index: {}]   ;;  %s944_s2 = inlined_call_operand.vmem [shape: f32[2,1,128], index: 2, kind: input, shape index: {}]   ;;  %s945_s3 = inlined_call_operand.vmem [shape: f32[128,128], index: 3, kind: input, shape index: {}]   ;;  %s946_s4 = inlined_call_operand.vmem [shape: f32[128,128], index: 4, kind: input, shape index: {}]   ;;  %s947_s5 = inlined_call_operand.vmem [shape: f32[128,4], index: 5, kind: input, shape index: {}]   ;;  %s948_s6 = inlined_call_operand.vmem [shape: f32[2], index: 6, kind: input, shape index: {}]   ;;  %s949_s7 = inlined_call_operand.vmem [shape: f32[2,8,4], index: 7, kind: output, shape index: {}]  }
   0x1   :  { %s741_s26 = smov 0  }
   0x2 LB: > { %s599_s27 = sadd.s32 4294967295, %s694_s26   ;;  %s30_s28 = sadd.s32 1, %s690_s25  ;;  %s694_s26 = sphi %s741_s26, %s18_s26   ;;  %s690_s25 = sphi %s739_s25, %s951_s25   ;;  %s686_s24 = sphi %s737_s24, %s950_s24  }
   0x3   : > { %p32_p0 = scmp.ge.s32.totalorder %s30_s28, 2  ;;  %p601_p1 = scmp.ge.s32.totalorder %s694_s26, 1 }
   0x4   : > { %p227_p2 = scmp.lt.s32.totalorder %s694_s26, 3  ;;  %p620_p4 = scmp.eq.s32.totalorder %s599_s27, 0 }
   0x5   : > { %s953_s28 = smov (%p32_p0, %s30_s28), 0  ;;  %s248_s8 = sshll.u32 %s948_s6, 4  ;;  %s249_s8 = int_to_ptr.vmem [resolvable:$true] %s248_s8 }
   0x6   : > { %p228_p3 = pnand %p601_p1, %p227_p2  ;;  %s696_s9 = smov [#allocation2]  }
   0x8   : > { %p616_p5 = pneg %p228_p3  ;;  %283 = sbr.rel (%p228_p3) target bundleno = 345 (0x159), region = 48 }
   0xa   : > { %p617_p6 = pnand %p620_p4, %p616_p5 }
   0xc   : > { %619 = dma.vmem_to_smem (!%p617_p6), %s249_s8, 16, %s696_s9, [#allocation3]  }
   0xd   : > { %681 = dma.done.wait (%p620_p4), [#allocation3], 16  }
   0xe   : > { %683 = vsyncadd (%p620_p4), [#allocation3], 4294967280 }
   0xf   : > { %290 = sfence }
  0x10   : > { %v384_v0 = vld [vmem:[%s946_s4 + $0x78] sm:$0xff]  ;;  %v383_v2 = vld [vmem:[%s946_s4 + $0x70] sm:$0xff]  ;;  %v382_v4 = vld [vmem:[%s946_s4 + $0x68] sm:$0xff]  ;;  %p327_p7 = scmp.lt.s32.totalorder %s686_s24, 1  ;;  %s608_s9 = sld [smem:[#allocation2 + $0x1]]  ;;  %vm492_vm4 = vcmask 31744  }
  0x11   : > { %v368_v1 = vld [vmem:[%s945_s3 + $0x78] sm:$0xff]  ;;  %385 = vmatpush.msra.mxu0 %v384_v0  ;;  %v367_v3 = vld [vmem:[%s945_s3 + $0x70] sm:$0xff]  ;;  %v366_v5 = vld [vmem:[%s945_s3 + $0x68] sm:$0xff] }
  0x12   : > { %405 = vmatpush.msra.mxu1 %v368_v1  ;;  %v381_v6 = vld [vmem:[%s946_s4 + $0x60] sm:$0xff]  ;;  %v380_v8 = vld [vmem:[%s946_s4 + $0x58] sm:$0xff]  ;;  %s955_s24 = smov (!%p327_p7, %s686_s24), 1  ;;  %v379_v10 = vld [vmem:[%s946_s4 + $0x50] sm:$0xff] }
  0x13   : > { %386 = vmatpush.msra.mxu0 %v383_v2  ;;  %v365_v7 = vld [vmem:[%s945_s3 + $0x60] sm:$0xff]  ;;  %v364_v9 = vld [vmem:[%s945_s3 + $0x58] sm:$0xff]  ;;  %v363_v11 = vld [vmem:[%s945_s3 + $0x50] sm:$0xff]  ;;  %s336_s21 = scalar_lea.vmem %s943_s1, %s955_s24  ;;  %s606_s11 = sshll.u32 %s955_s24, 3 }
  0x14   : > { %406 = vmatpush.msra.mxu1 %v367_v3  ;;  %v378_v12 = vld [vmem:[%s946_s4 + $0x48] sm:$0xff]  ;;  %v450_v14 = vld [vmem:[%s947_s5 + $0x78] sm:$0xff]  ;;  %v377_v15 = vld [vmem:[%s946_s4 + $0x40] sm:$0xff]  ;;  %s333_s8 = scalar_lea.vmem %s942_s0, %s606_s11  ;;  %s339_s14 = scalar_lea.vmem %s944_s2, %s955_s24 }
  0x15   : > { %387 = vmatpush.msra.mxu0 %v382_v4  ;;  %v362_v13 = vld [vmem:[%s945_s3 + $0x48] sm:$0xff]  ;;  %v361_v16 = vld [vmem:[%s945_s3 + $0x40] sm:$0xff]  ;;  %453 = vmatpush.msra.mxu2 %v450_v14  ;;  %v449_v17 = vld [vmem:[%s947_s5 + $0x70] sm:$0xff]  ;;  %s346_s13 = scalar_lea.vmem %s949_s7, %s606_s11 }
  0x16   : > { %407 = vmatpush.msra.mxu1 %v366_v5  ;;  %v448_v18 = vld [vmem:[%s947_s5 + $0x68] sm:$0xff]  ;;  %v376_v19 = vld [vmem:[%s946_s4 + $0x38] sm:$0xff]  ;;  %v447_v21 = vld [vmem:[%s947_s5 + $0x60] sm:$0xff]  ;;  %v452_v59 = vstv %s608_s9 }
  0x17   : > { %388 = vmatpush.msra.mxu0 %v381_v6  ;;  %v360_v20 = vld [vmem:[%s945_s3 + $0x38] sm:$0xff]  ;;  %454 = vmatpush.msra.mxu2 %v449_v17  ;;  %v375_v22 = vld [vmem:[%s946_s4 + $0x30] sm:$0xff]  ;;  %v374_v25 = vld [vmem:[%s946_s4 + $0x28] sm:$0xff] }
  0x18   : > { %408 = vmatpush.msra.mxu1 %v365_v7  ;;  %v359_v23 = vld [vmem:[%s945_s3 + $0x30] sm:$0xff]  ;;  %v446_v24 = vld [vmem:[%s947_s5 + $0x58] sm:$0xff]  ;;  %v358_v26 = vld [vmem:[%s945_s3 + $0x28] sm:$0xff] }
  0x19   : > { %389 = vmatpush.msra.mxu0 %v380_v8  ;;  %455 = vmatpush.msra.mxu2 %v448_v18  ;;  %v445_v27 = vld [vmem:[%s947_s5 + $0x50] sm:$0xff]  ;;  %v373_v28 = vld [vmem:[%s946_s4 + $0x20] sm:$0xff]  ;;  %v444_v30 = vld [vmem:[%s947_s5 + $0x48] sm:$0xff] }
  0x1a   : > { %409 = vmatpush.msra.mxu1 %v364_v9  ;;  %v357_v29 = vld [vmem:[%s945_s3 + $0x20] sm:$0xff]  ;;  %v372_v31 = vld [vmem:[%s946_s4 + $0x18] sm:$0xff]  ;;  %v371_v34 = vld [vmem:[%s946_s4 + $0x10] sm:$0xff] }
  0x1b   : > { %390 = vmatpush.msra.mxu0 %v379_v10  ;;  %456 = vmatpush.msra.mxu2 %v447_v21  ;;  %v356_v32 = vld [vmem:[%s945_s3 + $0x18] sm:$0xff]  ;;  %v443_v33 = vld [vmem:[%s947_s5 + $0x40] sm:$0xff]  ;;  %v355_v35 = vld [vmem:[%s945_s3 + $0x10] sm:$0xff] }
  0x1c   : > { %410 = vmatpush.msra.mxu1 %v363_v11  ;;  %v647_v36 = vld [vmem:[%s336_s21] ss:$0 sm:$0xff]  ;;  %v442_v38 = vld [vmem:[%s947_s5 + $0x38] sm:$0xff]  ;;  %v370_v39 = vld [vmem:[%s946_s4 + $0x8] sm:$0xff] }
  0x1d   : > { %391 = vmatpush.msra.mxu0 %v378_v12  ;;  %457 = vmatpush.msra.mxu2 %v446_v24  ;;  %v347_v37 = vld [vmem:[%s333_s8] sm:$0xff]  ;;  %v354_v40 = vld [vmem:[%s945_s3 + $0x8] sm:$0xff]  ;;  %v441_v41 = vld [vmem:[%s947_s5 + $0x30] sm:$0xff]  ;;  %s430_s8 = sld [smem:[#allocation2]] }
  0x1e   : > { %411 = vmatpush.msra.mxu1 %v362_v13  ;;  %v369_v42 = vld [vmem:[%s946_s4] sm:$0xff]  ;;  %v352_v44 = vmul.f32 %v647_v36, %v347_v37  ;;  %v440_v45 = vld [vmem:[%s947_s5 + $0x28] sm:$0xff]  ;;  %v438_v47 = vld [vmem:[%s947_s5 + $0x18] sm:$0xff] }
  0x1f   : > { %392 = vmatpush.msra.mxu0 %v377_v15  ;;  %458 = vmatpush.msra.mxu2 %v445_v27  ;;  %v353_v43 = vld [vmem:[%s945_s3] sm:$0xff]  ;;  %v437_v48 = vld [vmem:[%s947_s5 + $0x10] sm:$0xff]  ;;  %v436_v49 = vld [vmem:[%s947_s5 + $0x8] sm:$0xff] }
  0x20   : > { %412 = vmatpush.msra.mxu1 %v361_v16  ;;  %v439_v46 = vld [vmem:[%s947_s5 + $0x20] sm:$0xff] }
  0x21   : > { %393 = vmatpush.msra.mxu0 %v376_v19  ;;  %459 = vmatpush.msra.mxu2 %v444_v30  ;;  %v435_v50 = vld [vmem:[%s947_s5] sm:$0xff] }
  0x22   : > { %413 = vmatpush.msra.mxu1 %v360_v20  ;;  %v648_v51 = vld [vmem:[%s339_s14] ss:$0 sm:$0xff] }
  0x23   : > { %394 = vmatpush.msra.mxu0 %v375_v22  ;;  %460 = vmatpush.msra.mxu2 %v443_v33  ;;  %v432_v55 = vstv %s430_s8 }
  0x24   : > { %414 = vmatpush.msra.mxu1 %v359_v23 }
  0x25   : > { %395 = vmatpush.msra.mxu0 %v374_v25  ;;  %461 = vmatpush.msra.mxu2 %v442_v38 }
  0x26   : > { %415 = vmatpush.msra.mxu1 %v358_v26 }
  0x27   : > { %396 = vmatpush.msra.mxu0 %v373_v28  ;;  %462 = vmatpush.msra.mxu2 %v441_v41 }
  0x28   : > { %416 = vmatpush.msra.mxu1 %v357_v29 }
  0x29   : > { %397 = vmatpush.msra.mxu0 %v372_v31  ;;  %463 = vmatpush.msra.mxu2 %v440_v45 }
  0x2a   : > { %417 = vmatpush.msra.mxu1 %v356_v32 }
  0x2b   : > { %398 = vmatpush.msra.mxu0 %v371_v34  ;;  %464 = vmatpush.msra.mxu2 %v439_v46 }
  0x2c   : > { %418 = vmatpush.msra.mxu1 %v355_v35 }
  0x2d   : > { %399 = vmatpush.msra.mxu0 %v370_v39  ;;  %465 = vmatpush.msra.mxu2 %v438_v47 }
  0x2e   : > { %419 = vmatpush.msra.mxu1 %v354_v40 }
  0x2f   : > { %400 = vmatpush.msra.mxu0 %v369_v42  ;;  %466 = vmatpush.msra.mxu2 %v437_v48 }
  0x30   : > { %420 = vmatpush.msra.mxu1 %v353_v43  ;;  %401 = vmatmul.f32.vlgmr.msra.gmra.mxu0 %v352_v44 }
  0x31   : > { %421 = vmatmul.f32.vlgmr.msra.gmra.mxu1 %v347_v37  ;;  %467 = vmatpush.msra.mxu2 %v436_v49 }
  0x33   : > { %468 = vmatpush.msra.mxu2 %v435_v50 }
  0xad   : > { %v402_v52 = vpop.f32.mrf.mxu0 }
  0xae   : > { %v422_v53 = vpop.f32.mrf.mxu1 }
  0xaf   : > { %v423_v54 = vadd.f32 %v422_v53, %v402_v52 }
  0xb1   : > { %v429_v56 = vadd.f32 %v648_v51, %v423_v54 }
  0xb3   : > { %vm431_vm0 = vcmp.ge.f32.partialorder %v429_v56, 0.0  ;;  %v433_v57 = vmul.f32 %v432_v55, %v429_v56 }
  0xb5   : > { %v434_v58 = vsel %vm431_vm0, %v429_v56, %v433_v57 }
  0xb6   : > { %469 = vmatmul.f32.vlgmr.msra.gmra.mxu2 %v434_v58 }
 0x139   : > { %v470_v60 = vpop.f32.mrf.mxu2 }
 0x13a   : > { %v471_v61 = vadd.f32 %v470_v60, %v452_v59 }
 0x13c   : > { %v609_v62 = vmul.f32 -1.442695, %v471_v61 }
 0x13e   : > { %649 = vpow2.f32 %v609_v62 }
 0x144   : > { %v650_v63 = vpop.eup %649 }
 0x145   : > { %v476_v0 = vadd.f32 1.0, %v650_v63 }
 0x147   : > { %651 = vrcp.f32 %v476_v0  ;;  %v488_v4 = vand.u32 2147483648, %v476_v0  ;;  %v486_v6 = vand.u32 2147483647, %v476_v0  ;;  %vm482_vm2 = vweird.f32 %v476_v0 }
 0x149   : > { %v489_v8 = vor.u32 1.1754944e-38, %v488_v4  ;;  %vm487_vm5 = vcmp.eq.f32.partialorder %v486_v6, 8.507059e+37 }
 0x14d   : > { %v652_v1 = vpop.eup %651 }
 0x14e   : > { %v478_v2 = vmul.f32 %v652_v1, %v476_v0  ;;  %vm483_vm1 = vweird.f32 %v652_v1 }
 0x14f   : > { %vm484_vm3 = vmor %vm482_vm2, %vm483_vm1 }
 0x150   : > { %v479_v3 = vsub.f32 1.0, %v478_v2 }
 0x152   : > { %v480_v5 = vmul.f32 %v652_v1, %v479_v3 }
 0x154   : > { %v481_v7 = vadd.f32 %v652_v1, %v480_v5 }
 0x156   : > { %v485_v9 = vsel %vm484_vm3, %v652_v1, %v481_v7 }
 0x157   : > { %v490_v10 = vsel %vm487_vm5, %v489_v8, %v485_v9 }
 0x158   : > { %493 = vst.msk [vmem:[%s346_s13] sm:$0xff] %vm492_vm4, %v490_v10 }
 0x159 PF: > { %s18_s26 = sadd.s32 1, %s694_s26   ;;  %s950_s24 = smov %s690_s25 }
 0x15a   : > { %p15_p8 = scmp.ge.s32.totalorder %s18_s26, 4   ;;  %s951_s25 = smov %s953_s28 }
 0x15c   :  { %17 = sbr.rel (!%p15_p8) target bundleno = 2 (0x2), region = 89 }
 0x161   :  { %519 = vsyncpa [#allocation3], 1 }
 0x162   :  { %521 = vsyncpa [#allocation3 + $0x1], 1 }

</bundles_post_ra>
